<compile_context>
chip_gen: v7x
topology: tpu7x:2x2x1
jax: 0.10.0
libtpu: 0.0.40
codegen_flags: <defaults>
</compile_context>

<pallas_src>
import jax
import jax.numpy as jnp
import numpy as np
from jax.experimental import pallas as pl
from jax.experimental.pallas import tpu as pltpu

# Hyperparameters from the PyTorch module
EMBEDDING_SIZE = 2
NUM_CLASSES = 2
NUM_FILTERS = 2
SEQUENCE_LENGTH = 3
VOCAB_SIZE = 8          # |word_dict| for this synthetic setup
KERNEL_HEIGHTS = (2, 3)  # conv1, conv2

BATCH = 16              # example batch (wrapper pads any B to a multiple of TB)
TB = 8                  # batch tile (sublane-aligned)
CPAD = 128              # lane-dense padded class dim


def textcnn_kernel(ids_ref, wbig_ref, bbig_ref, wfc_ref, bfc_ref, out_ref):
    ids = ids_ref[...]                                   # (TB, S) int32
    tb, S = ids.shape
    V = VOCAB_SIZE
    F = NUM_FILTERS

    # Build the flattened one-hot (TB, S*V) in-kernel: column s*V + ids[b, s]
    # is 1.  Pure 2-D VPU work: one iota + S compare/selects, no reshapes.
    col = jax.lax.broadcasted_iota(jnp.int32, (tb, S * V), 1)
    onehot = jnp.zeros((tb, S * V), jnp.float32)
    for s in range(S):                                   # static unroll, S = 3
        hit = col == (s * V + ids[:, s:s + 1])           # lane-broadcast compare
        onehot = jnp.where(hit, jnp.float32(1.0), onehot)

    # One matmul computes embedding + both convs at every output position:
    # acts[:, off_c + p*F + f] = conv_c output at position p, filter f.
    acts = jnp.dot(onehot, wbig_ref[...],
                   preferred_element_type=jnp.float32) + bbig_ref[...]
    acts = jnp.maximum(acts, 0.0)                        # ReLU

    # Max-pool over positions for each conv branch (static lane slices).
    pooled = []
    off = 0
    for K in KERNEL_HEIGHTS:
        P = S - K + 1
        x = acts[:, off:off + F]
        for p in range(1, P):
            x = jnp.maximum(x, acts[:, off + p * F: off + (p + 1) * F])
        pooled.append(x)
        off += P * F

    feat = jnp.concatenate(pooled, axis=-1)              # (TB, 2F)

    # Single fc matmul into a lane-dense (TB, 128) tile (zero-padded classes).
    out = jnp.dot(feat, wfc_ref[...],
                  preferred_element_type=jnp.float32) + bfc_ref[...]
    out_ref[...] = out.astype(out_ref.dtype)


def _fold_params(params):
    """Host-side, one-time: fold embedding into conv weights and build the
    block-structured W_big / b_big plus the lane-padded fc weight/bias."""
    wemb, w1, b1, w2, b2, wfc, bfc = params
    V, _ = wemb.shape
    F = w1.shape[2]
    S = SEQUENCE_LENGTH

    blocks, bias_cols = [], []
    for (w, b) in ((w1, b1), (w2, b2)):
        K = w.shape[0]
        P = S - K + 1
        wc = [wemb @ w[k] for k in range(K)]             # (V, F) per tap
        wbig_c = jnp.zeros((S * V, P * F), jnp.float32)
        for p in range(P):
            for k in range(K):
                s = p + k
                wbig_c = wbig_c.at[s * V:(s + 1) * V, p * F:(p + 1) * F].set(wc[k])
        blocks.append(wbig_c)
        bias_cols.append(jnp.tile(b, (1, P)))            # (1, P*F)

    wbig = jnp.concatenate(blocks, axis=1)               # (S*V, (P1+P2)*F)
    bbig = jnp.concatenate(bias_cols, axis=1)            # (1, (P1+P2)*F)

    wfc_pad = jnp.zeros((wfc.shape[0], CPAD), jnp.float32).at[:, :wfc.shape[1]].set(wfc)
    bfc_pad = jnp.zeros((1, CPAD), jnp.float32).at[:, :bfc.shape[1]].set(bfc)
    return wbig, bbig, wfc_pad, bfc_pad


def textcnn_forward(ids, params):
    """ids: (B, S) int32 token ids.  Returns (B, NUM_CLASSES) float32."""
    wbig, bbig, wfc_pad, bfc_pad = _fold_params(params)
    S = SEQUENCE_LENGTH
    B = ids.shape[0]

    # Pad batch to a multiple of TB (padded rows are sliced off afterwards).
    B_pad = ((B + TB - 1) // TB) * TB
    if B_pad != B:
        ids = jnp.pad(ids, ((0, B_pad - B), (0, 0)))
    nb = B_pad // TB
    wcols = wbig.shape[1]

    out_pad = pl.pallas_call(
        textcnn_kernel,
        out_shape=jax.ShapeDtypeStruct((B_pad, CPAD), jnp.float32),
        grid_spec=pltpu.PrefetchScalarGridSpec(
            num_scalar_prefetch=0,
            grid=(nb,),
            in_specs=[
                pl.BlockSpec((TB, S), lambda i: (i, 0)),            # ids tile
                pl.BlockSpec(wbig.shape, lambda i: (0, 0)),          # W_big
                pl.BlockSpec((1, wcols), lambda i: (0, 0)),          # b_big
                pl.BlockSpec(wfc_pad.shape, lambda i: (0, 0)),       # fc weight (lane-padded)
                pl.BlockSpec((1, CPAD), lambda i: (0, 0)),           # fc bias (lane-padded)
            ],
            out_specs=pl.BlockSpec((TB, CPAD), lambda i: (i, 0)),
        ),
        compiler_params=pltpu.CompilerParams(
            dimension_semantics=("parallel",)),                      # v7x: shard batch tiles over both TCs
    )(ids, wbig, bbig, wfc_pad, bfc_pad)

    return out_pad[:B, :NUM_CLASSES]


def reference_forward(ids, params):
    """Pure-JAX mirror of the PyTorch forward (for correctness checking)."""
    wemb, w1, b1, w2, b2, wfc, bfc = params
    x = jax.nn.one_hot(ids, VOCAB_SIZE, dtype=jnp.float32)   # (B, S, V)
    emb = x @ wemb                                           # (B, S, E)

    def conv(w, b):
        K = w.shape[0]
        P = SEQUENCE_LENGTH - K + 1
        acc = jnp.zeros((ids.shape[0], P, w.shape[2]), jnp.float32)
        for k in range(K):
            acc = acc + emb[:, k:k + P, :] @ w[k]
        acc = acc + b[None]
        return jnp.max(jax.nn.relu(acc), axis=1)

    feat = jnp.concatenate([conv(w1, b1), conv(w2, b2)], axis=-1)
    return feat @ wfc + bfc


if __name__ == "__main__":
    key = jax.random.PRNGKey(0)
    keys = jax.random.split(key, 8)

    wemb = jax.random.normal(keys[0], (VOCAB_SIZE, EMBEDDING_SIZE), jnp.float32) * 0.5
    w1 = jax.random.normal(keys[1], (2, EMBEDDING_SIZE, NUM_FILTERS), jnp.float32) * 0.5
    b1 = jax.random.normal(keys[2], (1, NUM_FILTERS), jnp.float32) * 0.1
    w2 = jax.random.normal(keys[3], (3, EMBEDDING_SIZE, NUM_FILTERS), jnp.float32) * 0.5
    b2 = jax.random.normal(keys[4], (1, NUM_FILTERS), jnp.float32) * 0.1
    wfc = jax.random.normal(keys[5], (2 * NUM_FILTERS, NUM_CLASSES), jnp.float32) * 0.5
    bfc = jax.random.normal(keys[6], (1, NUM_CLASSES), jnp.float32) * 0.1
    params = (wemb, w1, b1, w2, b2, wfc, bfc)

    ids = jax.random.randint(keys[7], (BATCH, SEQUENCE_LENGTH), 0, VOCAB_SIZE).astype(jnp.int32)

    out = jax.block_until_ready(textcnn_forward(ids, params))
    ref = jax.block_until_ready(reference_forward(ids, params))
    np.testing.assert_allclose(np.asarray(out), np.asarray(ref), rtol=1e-5, atol=1e-5)
    assert out.shape == (BATCH, NUM_CLASSES)
    print("KERNEL_OK")
</pallas_src>

<mosaic_0001>
module attributes {stable_mosaic.version = 11 : i64} {
  func.func @textcnn_kernel(%arg0: i32, %arg1: memref<8x3xi32, #tpu.memory_space<vmem>>, %arg2: memref<24x6xf32, #tpu.memory_space<vmem>>, %arg3: memref<1x6xf32, #tpu.memory_space<vmem>>, %arg4: memref<4x128xf32, #tpu.memory_space<vmem>>, %arg5: memref<1x128xf32, #tpu.memory_space<vmem>>, %arg6: memref<8x128xf32, #tpu.memory_space<vmem>>) attributes {dimension_semantics = [#tpu.dimension_semantics<parallel>], iteration_bounds = array<i64: 2>, scalar_prefetch = 0 : i64, scratch_operands = 0 : i64, tpu.core_type = #tpu.core_type<tc>, window_params = [{transform_indices = @transform_0, window_bounds = array<i64: 8, 3>}, {pipeline_mode = #tpu.pipeline_mode<synchronous>, transform_indices = @transform_1, window_bounds = array<i64: 24, 6>}, {pipeline_mode = #tpu.pipeline_mode<synchronous>, transform_indices = @transform_2, window_bounds = array<i64: 1, 6>}, {pipeline_mode = #tpu.pipeline_mode<synchronous>, transform_indices = @transform_3, window_bounds = array<i64: 4, 128>}, {pipeline_mode = #tpu.pipeline_mode<synchronous>, transform_indices = @transform_4, window_bounds = array<i64: 1, 128>}, {transform_indices = @transform_5, window_bounds = array<i64: 8, 128>}]} {
    %c0 = arith.constant 0 : index
    %c0_0 = arith.constant 0 : index
    %0 = vector.load %arg1[%c0, %c0_0] : memref<8x3xi32, #tpu.memory_space<vmem>>, vector<8x3xi32>
    %1 = tpu.iota {dimensions = array<i32: 1>} : vector<8x24xi32>
    %cst = arith.constant 0.000000e+00 : f32
    %2 = vector.broadcast %cst : f32 to vector<8x24xf32>
    %3 = vector.extract_strided_slice %0 {offsets = [0, 0], sizes = [8, 1], strides = [1, 1]} : vector<8x3xi32> to vector<8x1xi32>
    %c0_i32 = arith.constant 0 : i32
    %4 = vector.broadcast %c0_i32 : i32 to vector<8x1xi32>
    %5 = arith.addi %4, %3 : vector<8x1xi32>
    %6 = vector.broadcast %5 : vector<8x1xi32> to vector<8x24xi32>
    %7 = arith.cmpi eq, %1, %6 : vector<8x24xi32>
    %cst_1 = arith.constant 1.000000e+00 : f32
    %8 = vector.broadcast %cst_1 : f32 to vector<8x24xf32>
    %9 = arith.select %7, %8, %2 : vector<8x24xi1>, vector<8x24xf32>
    %10 = vector.extract_strided_slice %0 {offsets = [0, 1], sizes = [8, 1], strides = [1, 1]} : vector<8x3xi32> to vector<8x1xi32>
    %c8_i32 = arith.constant 8 : i32
    %11 = vector.broadcast %c8_i32 : i32 to vector<8x1xi32>
    %12 = arith.addi %11, %10 : vector<8x1xi32>
    %13 = vector.broadcast %12 : vector<8x1xi32> to vector<8x24xi32>
    %14 = arith.cmpi eq, %1, %13 : vector<8x24xi32>
    %cst_2 = arith.constant 1.000000e+00 : f32
    %15 = vector.broadcast %cst_2 : f32 to vector<8x24xf32>
    %16 = arith.select %14, %15, %9 : vector<8x24xi1>, vector<8x24xf32>
    %17 = vector.extract_strided_slice %0 {offsets = [0, 2], sizes = [8, 1], strides = [1, 1]} : vector<8x3xi32> to vector<8x1xi32>
    %c16_i32 = arith.constant 16 : i32
    %18 = vector.broadcast %c16_i32 : i32 to vector<8x1xi32>
    %19 = arith.addi %18, %17 : vector<8x1xi32>
    %20 = vector.broadcast %19 : vector<8x1xi32> to vector<8x24xi32>
    %21 = arith.cmpi eq, %1, %20 : vector<8x24xi32>
    %cst_3 = arith.constant 1.000000e+00 : f32
    %22 = vector.broadcast %cst_3 : f32 to vector<8x24xf32>
    %23 = arith.select %21, %22, %16 : vector<8x24xi1>, vector<8x24xf32>
    %c0_4 = arith.constant 0 : index
    %c0_5 = arith.constant 0 : index
    %24 = vector.load %arg2[%c0_4, %c0_5] : memref<24x6xf32, #tpu.memory_space<vmem>>, vector<24x6xf32>
    %cst_6 = arith.constant dense<0.000000e+00> : vector<8x6xf32>
    %25 = tpu.matmul %23, %24, %cst_6 {dimension_numbers = #tpu.dot_dimension_numbers<[1], [0], [0], [1], [0, 0, 1, 1], [], []>} : vector<8x24xf32>, vector<24x6xf32>, vector<8x6xf32> -> vector<8x6xf32>
    %c0_7 = arith.constant 0 : index
    %c0_8 = arith.constant 0 : index
    %26 = vector.load %arg3[%c0_7, %c0_8] : memref<1x6xf32, #tpu.memory_space<vmem>>, vector<1x6xf32>
    %27 = vector.broadcast %26 : vector<1x6xf32> to vector<8x6xf32>
    %28 = arith.addf %25, %27 : vector<8x6xf32>
    %cst_9 = arith.constant 0.000000e+00 : f32
    %29 = vector.broadcast %cst_9 : f32 to vector<8x6xf32>
    %30 = arith.maximumf %28, %29 : vector<8x6xf32>
    %31 = vector.extract_strided_slice %30 {offsets = [0, 0], sizes = [8, 2], strides = [1, 1]} : vector<8x6xf32> to vector<8x2xf32>
    %32 = vector.extract_strided_slice %30 {offsets = [0, 2], sizes = [8, 2], strides = [1, 1]} : vector<8x6xf32> to vector<8x2xf32>
    %33 = arith.maximumf %31, %32 : vector<8x2xf32>
    %34 = vector.extract_strided_slice %30 {offsets = [0, 4], sizes = [8, 2], strides = [1, 1]} : vector<8x6xf32> to vector<8x2xf32>
    %35 = tpu.concatenate %33, %34 in 1 : vector<8x2xf32>, vector<8x2xf32> -> vector<8x4xf32>
    %c0_10 = arith.constant 0 : index
    %c0_11 = arith.constant 0 : index
    %36 = vector.load %arg4[%c0_10, %c0_11] : memref<4x128xf32, #tpu.memory_space<vmem>>, vector<4x128xf32>
    %cst_12 = arith.constant dense<0.000000e+00> : vector<8x128xf32>
    %37 = tpu.matmul %35, %36, %cst_12 {dimension_numbers = #tpu.dot_dimension_numbers<[1], [0], [0], [1], [0, 0, 1, 1], [], []>} : vector<8x4xf32>, vector<4x128xf32>, vector<8x128xf32> -> vector<8x128xf32>
    %c0_13 = arith.constant 0 : index
    %c0_14 = arith.constant 0 : index
    %38 = vector.load %arg5[%c0_13, %c0_14] : memref<1x128xf32, #tpu.memory_space<vmem>>, vector<1x128xf32>
    %39 = vector.broadcast %38 : vector<1x128xf32> to vector<8x128xf32>
    %40 = arith.addf %37, %39 : vector<8x128xf32>
    %c0_15 = arith.constant 0 : index
    %c0_16 = arith.constant 0 : index
    %41 = vector.load %arg6[%c0_15, %c0_16] : memref<8x128xf32, #tpu.memory_space<vmem>>, vector<8x128xf32>
    tpu.vector_store %arg6[%c0_15, %c0_16], %40 {strides = array<i32>} : memref<8x128xf32, #tpu.memory_space<vmem>>, vector<8x128xf32>,
    return
  }
  func.func @transform_0(%arg0: i32) -> (i32, i32) {
    %c0_i32 = arith.constant 0 : i32
    %c0_i32_0 = arith.constant 0 : i32
    return %arg0, %c0_i32 : i32, i32
  }
  func.func @transform_1(%arg0: i32) -> (i32, i32) {
    %c0_i32 = arith.constant 0 : i32
    %c0_i32_0 = arith.constant 0 : i32
    %c0_i32_1 = arith.constant 0 : i32
    return %c0_i32, %c0_i32_0 : i32, i32
  }
  func.func @transform_2(%arg0: i32) -> (i32, i32) {
    %c0_i32 = arith.constant 0 : i32
    %c0_i32_0 = arith.constant 0 : i32
    %c0_i32_1 = arith.constant 0 : i32
    return %c0_i32, %c0_i32_0 : i32, i32
  }
  func.func @transform_3(%arg0: i32) -> (i32, i32) {
    %c0_i32 = arith.constant 0 : i32
    %c0_i32_0 = arith.constant 0 : i32
    %c0_i32_1 = arith.constant 0 : i32
    return %c0_i32, %c0_i32_0 : i32, i32
  }
  func.func @transform_4(%arg0: i32) -> (i32, i32) {
    %c0_i32 = arith.constant 0 : i32
    %c0_i32_0 = arith.constant 0 : i32
    %c0_i32_1 = arith.constant 0 : i32
    return %c0_i32, %c0_i32_0 : i32, i32
  }
  func.func @transform_5(%arg0: i32) -> (i32, i32) {
    %c0_i32 = arith.constant 0 : i32
    %c0_i32_0 = arith.constant 0 : i32
    return %arg0, %c0_i32 : i32, i32
  }
}

</mosaic_0001>

<bundles_post_ra>
// kernel: tpu_custom_call.1
= control target key start
LH: loop header
LB: loop body
LE: loop exit
PB: predicated region body
PF: predicated region fallthrough
CT: control target
= control target key end

     0   :  { %10 = vsyncpa [#allocation3], 0  ;;  %s800_s0 = inlined_call_operand.vmem [shape: s32[16,3], index: 0, kind: input, shape index: {}]   ;;  %s801_s1 = inlined_call_operand.vmem [shape: f32[24,6], index: 1, kind: input, shape index: {}]   ;;  %s802_s2 = inlined_call_operand.vmem [shape: f32[1,6], index: 2, kind: input, shape index: {}]   ;;  %s803_s3 = inlined_call_operand.vmem [shape: f32[4,128], index: 3, kind: input, shape index: {}]   ;;  %s804_s4 = inlined_call_operand.vmem [shape: f32[1,128], index: 4, kind: input, shape index: {}]   ;;  %s805_s5 = inlined_call_operand.hbm [shape: f32[16,128], index: 5, kind: output, shape index: {}]  }
   0x1   :  { %12 = vsyncpa [#allocation3 + $0x1], 0  ;;  %s682_s18 = smov 0   ;;  %s684_s19 = smov 0  }
   0x2   :  { %s686_s20 = smov 0   ;;  %s688_s21 = smov 0  }
   0x3 LB: > { %s703_s22 = sadd.s32 4294967295, %s642_s21   ;;  %s492_s23 = sadd.s32 4294967294, %s642_s21   ;;  %s642_s21 = sphi %s688_s21, %s811_s21   ;;  %s638_s20 = sphi %s686_s20, %s810_s20   ;;  %s634_s19 = sphi %s684_s19, %s809_s19   ;;  %s630_s18 = sphi %s682_s18, %s808_s18  }
   0x4   : > { %s707_s24 = sadd.s32 1, %s642_s21   ;;  %s135_s25 = sadd.s32 1, %s638_s20 }
   0x5   : > { %s132_s26 = ssub.s32 %s642_s21, %s707_s24  ;;  %p145_p0 = scmp.ne.s32.totalorder %s638_s20, %s634_s19 }
   0x6   : > { %p133_p1 = scmp.eq.s32.totalorder %s132_s26, 0  ;;  %p146_p2 = scmp.eq.s32.totalorder %s703_s22, 1 }
   0x7   : > { %p151_p3 = scmp.ne.s32.totalorder %s634_s19, %s630_s18  ;;  %p152_p4 = scmp.eq.s32.totalorder %s492_s23, 1 }
   0x8   : > { %s718_s27 = scalar_select %p133_p1, %s638_s20, %s135_s25  }
   0x9   : > { %p720_p5 = por %p146_p2, %p145_p0  ;;  %p724_p6 = por %p152_p4, %p151_p3 }
   0xa   : > { %p495_p7 = scmp.ge.s32.totalorder %s642_s21, 1  ;;  %p189_p8 = scmp.lt.s32.totalorder %s642_s21, 3 }
   0xc   : > { %p190_p9 = pnand %p495_p7, %p189_p8 }
   0xd   : > { %p216_p10 = scmp.lt.s32.totalorder (!%p190_p9), %s703_s22, 1  ;;  %v644_v0 = vmov (!%p190_p9), 0   ;;  %v645_v1 = vmov (!%p190_p9), 2   ;;  %v646_v2 = vmov (!%p190_p9), 0.0   ;;  %v240_v5 = vld [vmem:[%s801_s1] sm:$0xff] (!%p190_p9)  ;;  %v241_v6 = vld [vmem:[%s801_s1 + $0x8] sm:$0xff] (!%p190_p9)  ;;  %v221_v12 = vlaneseq (!%p190_p9) }
   0xe   : > { %193 = sbr.rel (%p190_p9) target bundleno = 724 (0x2d4), region = 40  ;;  %576 = vset.pattern.permute.xlu0 (!%p190_p9), %v644_v0  ;;  %578 = vset.pattern.permute.xlu1 (!%p190_p9), %v645_v1  ;;  %v528_v8 = vpack.c.bf16 (!%p190_p9), %v241_v6, %v240_v5  ;;  %v647_v9 = vmov (!%p190_p9), 0.0|0.0   ;;  %v648_v10 = vmov (!%p190_p9), 1   ;;  %v242_v11 = vld [vmem:[%s801_s1 + $0x10] sm:$0xff] (!%p190_p9)  ;;  %vm649_vm0 = vmmov (!%p190_p9), 0   ;;  %s650_s26 = smov (!%p190_p9), 126  }
   0xf   : > { %522 = vmatprep.subr.mxu1 (!%p190_p9), %v646_v2  ;;  %527 = vmatprep.subr.bf16.mxu0 (!%p190_p9), %v647_v9  ;;  %v222_v13 = vand.u32 (!%p190_p9), 127, %v221_v12  ;;  %vm250_vm4 = vcmask (!%p190_p9), 195584   ;;  %v332_v20 = vld [vmem:[%s803_s3] sm:$0xf] (!%p190_p9)  ;;  %vm344_vm5 = vcmask (!%p190_p9), 1043456   ;;  %vm330_vm6 = vcmask (!%p190_p9), 15360  }
  0x10   : > { %529 = vmatpush3.bf16.msra.mxu0 (!%p190_p9), %v528_v8  ;;  %519 = vmatprep.mubr.msk.f32.mxu0 (!%p190_p9), %vm649_vm0, %v646_v2  ;;  %v498_v21 = vld [vmem:[%s802_s2] ss:$0 sm:$0xff] (!%p190_p9)  ;;  %vm340_vm7 = vcmask (!%p190_p9), 31744  }
  0x11   : > { %517 = vmatprep.subr.mxu0 (!%p190_p9), %v646_v2  ;;  %524 = vmatprep.mubr.msk.f32.mxu1 (!%p190_p9), %vm649_vm0, %v646_v2  ;;  %v500_v29 = vld [vmem:[%s804_s4] ss:$0 sm:$0xff] (!%p190_p9) }
  0x12   : > { %523 = vmatpush3.msk.msra.mxu1 (!%p190_p9), %vm344_vm5, %v332_v20 }
  0x14   : > { %518 = vmatpush3.msra.mxu0 (!%p190_p9), %v242_v11 }
  0x15   : > { %s217_s30 = scalar_select %p216_p10, %s703_s22, 1 }
  0x17   : > { %s497_s6 = sshll.u32 %s217_s30, 3  ;;  %s213_s30 = sand.u32 1, %s634_s19  }
  0x18   : > { %s219_s9 = scalar_lea.vmem %s800_s0, %s497_s6  ;;  %s496_s6 = sshll.u32 %s213_s30, 3 }
  0x19   : > { %v220_v3 = vld [vmem:[%s219_s9] sm:$0xff]  ;;  %s504_s9 = sshll.u32 %s703_s22, 7  ;;  %s215_s10 = scalar_lea.vmem [#allocation2], %s496_s6 }
  0x1a   : > { %224 = vperm.xlu0 %576, %v220_v3   ;;  %v234_v4 = vadd.s32 16, %v220_v3  ;;  %v228_v7 = vadd.s32 8, %v220_v3  ;;  %s433_s11 = sshll.u32 %s215_s10, 4  ;;  %s758_s14 = scalar_lea.hbm %s805_s5, %s504_s9  ;;  %s760_s11 = int_to_ptr.vmem [resolvable:$true] %s433_s11 }
  0x1b   : > { %s420_s15 = scalar_lea.sflag [#allocation3], %s213_s30  ;;  %s580_s16 = scalar_lea.vmem %s760_s11, 128 }
  0x1c   : > { %236 = vperm.xlu1 %578, %v234_v4   ;;  %p581_p11 = scmp.ne.s32.totalorder %s760_s11, %s580_s16  ;;  %s651_s22 = smov [#allocation2]  }
  0x1d   : > { %s584_s17 = sshll.u32 %s651_s22, 4  ;;  %s585_s17 = int_to_ptr.vmem [resolvable:$false] %s584_s17 }
  0x1e   : > { %577 = vset.pattern.permute.xlu0 %v648_v10  ;;  %p582_p12 = pnand %p581_p11, %p720_p5  ;;  %s586_s23 = scalar_lea.vmem %s585_s17, 256 }
  0x1f   : > { %230 = vperm.xlu0 %577, %v228_v7   ;;  %p587_p0 = scmp.lt.s32.totalorder %s760_s11, %s585_s17  ;;  %p588_p1 = scmp.lt.s32.totalorder %s586_s23, %s580_s16 }
  0x20   : > { %p583_p13 = pneg %p582_p12 }
  0x21   : > { %p589_p2 = por %p588_p1, %p587_p0 }
  0x23   : > { %579 = vset.pattern.permute.xlu0 %v645_v1  ;;  %p590_p3 = pnand %p589_p2, %p583_p13 }
  0x99   : > { %v225_v14 = vpop.permute.xlu0 %224 }
  0x9a   : > { %vm226_vm1 = vcmp.eq.s32.totalorder %v222_v13, %v225_v14 }
  0x9b   : > { %v237_v15 = vpop.permute.xlu1 %236  ;;  %v227_v17 = vsel %vm226_vm1, 1.0, %v646_v2 }
  0x9c   : > { %vm238_vm2 = vcmp.eq.s32.totalorder %v222_v13, %v237_v15 }
  0x9e   : > { %v231_v16 = vpop.permute.xlu0 %230 }
  0x9f   : > { %vm232_vm3 = vcmp.eq.s32.totalorder %v222_v13, %v231_v16 }
  0xa0   : > { %v233_v18 = vsel %vm232_vm3, 1.0, %v227_v17 }
  0xa1   : > { %v239_v19 = vsel %vm238_vm2, 1.0, %v233_v18 }
  0xa2   : > { %520 = vmatmul.mubr.msk.f32.vlgmr.msra.gmra.mrb[0].mxu0 %vm250_vm4, %v239_v19 }
 0x175   : > { %v320_v22 = vpop.f32.mrb[0].mxu0 }
 0x176   : > { %v321_v23 = vadd.f32 %v498_v21, %v320_v22  ;;  %v521_v24 = vpop.f32.mrb[1].mxu0 }
 0x178   : > { %v324_v25 = vmax.f32 %v321_v23, 0.0 }
 0x17a   : > { %326 = vrot.lane.b32.xlu1 %v324_v25, %s650_s26 }
 0x1ec   : > { %v327_v26 = vpop.permute.xlu1 %326 }
 0x1ed   : > { %v329_v27 = vmax.f32 %v324_v25, %v327_v26 }
 0x1ef   : > { %v331_v28 = vsel %vm330_vm6, %v329_v27, %v327_v26 }
 0x1f0   : > { %525 = vmatmul.mubr.msk.f32.vlgmr.msra.gmra.mrb[0].mxu1 %vm340_vm7, %v331_v28 }
 0x2c3   : > { %v414_v30 = vpop.f32.mrb[0].mxu1 }
 0x2c4   : > { %v415_v31 = vadd.f32 %v500_v29, %v414_v30  ;;  %v526_v32 = vpop.f32.mrb[1].mxu1 }
 0x2c6   : > { %418 = vst [vmem:[%s215_s10] sm:$0xff] %v415_v31 }
 0x2c7   : > { %593 = shalt.err (!%p590_p3)
}
 0x2c8   : > { %s594_s25 = scalar_lea.hbm %s758_s14, 128  ;;  %s598_s6 = scalar_lea.hbm %s805_s5, 256 }
 0x2c9   : > { %p595_p4 = scmp.ne.s32.totalorder %s758_s14, %s594_s25  ;;  %p599_p9 = scmp.lt.u32.totalorder %s758_s14, %s805_s5 }
 0x2ca   : > { %p600_p10 = scmp.lt.u32.totalorder %s598_s6, %s594_s25  ;;  %p602_p12 = scmp.lt.u32.totalorder %s594_s25, %s758_s14 }
 0x2cb   : > { %p596_p7 = pnand %p595_p4, %p720_p5 }
 0x2cc   : > { %p601_p11 = por %p600_p10, %p599_p9 }
 0x2cd   : > { %p597_p8 = pneg %p596_p7 }
 0x2ce   : > { %p603_p13 = por %p602_p12, %p601_p11 }
 0x2d0   : > { %p604_p0 = pnand %p603_p13, %p597_p8 }
 0x2d2   : > { %607 = shalt.err (!%p604_p0)
}
 0x2d3   : > { %530 = dma.vmem_to_hbm [thread:$0]  (%p720_p5), %s760_s11, 128, %s758_s14, %s420_s15  }
 0x2d4 PF: > { %p536_p1 = scmp.ge.s32.totalorder %s642_s21, 2  ;;  %s445_s9 = sand.u32 1, %s630_s18  }
 0x2d5   : > { %s446_s10 = scalar_lea.sflag [#allocation3], %s445_s9 }
 0x2d6   : > { %p533_p2 = pnand %p536_p1, %p724_p6 }
 0x2d8   : > { %625 = dma.done.wait (!%p533_p2), %s446_s10, 128  }
 0x2d9   : > { %627 = vsyncadd (!%p533_p2), %s446_s10, 4294967168  ;;  %p15_p3 = scmp.ge.s32.totalorder %s707_s24, 4   ;;  %s808_s18 = smov %s634_s19 }
 0x2da   : > { %s809_s19 = smov %s638_s20  ;;  %s810_s20 = smov %s718_s27 }
 0x2db   : > { %s811_s21 = smov %s707_s24  ;;  %17 = sbr.rel (!%p15_p3) target bundleno = 3 (0x3), region = 75 }
 0x2e2   :  { %451 = vsyncpa [#allocation3], 1 }
 0x2e3   :  { %453 = vsyncpa [#allocation3 + $0x1], 1 }

</bundles_post_ra>
